<compile_context>
chip_gen: v7x
topology: tpu7x:2x2x1
jax: 0.10.0
libtpu: 0.0.40
codegen_flags: <defaults>
</compile_context>

<pallas_src>
import functools

import numpy as np
import jax
import jax.numpy as jnp
from jax import lax
from jax.experimental import pallas as pl
from jax.experimental.pallas import tpu as pltpu

_MAX_LANES = 1024                        # widest lane-dense last dim we try
_TARGET_BLOCK_BYTES = 4 * 1024 * 1024    # ~4 MiB of payload per grid step


def _uniform_noise_kernel(seed_ref, x_ref, o_ref, *, sigma, lane_w):
    """o = x + U(-sigma, sigma); noise from a counter-based hash PRNG."""
    tile_m = x_ref.shape[0]

    # Global flat element index of every lane in this block.
    base = pl.program_id(0) * (tile_m * lane_w)                  # int32 scalar
    row = lax.broadcasted_iota(jnp.int32, x_ref.shape, 0)
    col = lax.broadcasted_iota(jnp.int32, x_ref.shape, 1)
    idx = (base + row * lane_w + col).astype(jnp.uint32)

    # Mix in the seed, then the "lowbias32" integer finalizer (good avalanche,
    # pure VPU work, fully portable).
    h = idx ^ (seed_ref[0].astype(jnp.uint32) * jnp.uint32(0x9E3779B9))
    h ^= h >> 16
    h *= jnp.uint32(0x7FEB352D)
    h ^= h >> 15
    h *= jnp.uint32(0x846CA68B)
    h ^= h >> 16

    # Signed-int view -> one convert + one scale gives symmetric U[-sigma, sigma).
    signed = lax.bitcast_convert_type(h, jnp.int32)
    noise = signed.astype(jnp.float32) * jnp.float32(sigma * 2.0 ** -31)

    o_ref[...] = (x_ref[...].astype(jnp.float32) + noise).astype(o_ref.dtype)


def _pick_lane_width(n: int) -> int:
    """Largest multiple of 128 (<= _MAX_LANES) that exactly divides n, else 0."""
    for w in range(_MAX_LANES, 0, -128):
        if n % w == 0:
            return w
    return 0


def gaussian_noise(img: jax.Array, sigma: float, seed: int = 0) -> jax.Array:
    """img (any float shape) -> img + U(-sigma, sigma) noise, same shape/dtype."""
    orig_shape = img.shape
    orig_dtype = img.dtype
    n = int(np.prod(orig_shape)) if len(orig_shape) else 1

    lane_w = _pick_lane_width(n)
    if lane_w:
        x = img.reshape(n // lane_w, lane_w)   # free reshape, lane-dense, no pad
        pad = 0
    else:
        # TODO(synk): ragged sizes (n % 128 != 0) pay one extra HBM pass for
        # pad + slice; could be removed with an in-kernel masked tail store.
        lane_w = 128
        pad = (-n) % lane_w
        x = jnp.pad(img.reshape(-1), (0, pad)).reshape(-1, lane_w)
    rows = x.shape[0]

    # ~4 MiB per block; force >= 2 grid steps when there are enough rows so
    # both v7x TensorCores get work; keep sublane dim 8-aligned unless the
    # block spans all rows.
    tile_m = max(8, _TARGET_BLOCK_BYTES // (lane_w * 4))
    if rows > 8:
        half = (((rows + 1) // 2) + 7) // 8 * 8      # round_up(cdiv(rows,2), 8)
        tile_m = min(tile_m, half)
    tile_m = min(tile_m, rows)
    if tile_m < rows:
        tile_m = max(8, (tile_m // 8) * 8)

    grid = (pl.cdiv(rows, tile_m),)
    seed_arr = jnp.asarray([seed], dtype=jnp.int32)

    out = pl.pallas_call(
        functools.partial(_uniform_noise_kernel, sigma=float(sigma), lane_w=lane_w),
        out_shape=jax.ShapeDtypeStruct((rows, lane_w), orig_dtype),
        grid_spec=pltpu.PrefetchScalarGridSpec(
            num_scalar_prefetch=1,
            grid=grid,
            in_specs=[pl.BlockSpec((tile_m, lane_w), lambda i, _s: (i, 0))],
            out_specs=pl.BlockSpec((tile_m, lane_w), lambda i, _s: (i, 0)),
        ),
        compiler_params=pltpu.CompilerParams(
            dimension_semantics=("parallel",),
            vmem_limit_bytes=48 * 1024 * 1024,
        ),
    )(seed_arr, x)

    out = out.reshape(-1)
    if pad:
        out = out[:n]
    return out.reshape(orig_shape)


if __name__ == "__main__":
    key = jax.random.PRNGKey(0)
    B, C, H, W = 2, 4, 16, 16
    sigma = 0.1

    img = jax.random.uniform(key, (B, C, H, W), dtype=jnp.float32)

    out = jax.block_until_ready(gaussian_noise(img, sigma, seed=42))

    assert out.shape == img.shape and out.dtype == img.dtype
    noise = np.asarray(out) - np.asarray(img)
    assert np.all(np.isfinite(noise)), "non-finite noise"
    assert np.all(np.abs(noise) <= sigma + 1e-5), "noise outside [-sigma, sigma]"
    assert float(np.std(noise)) > 0.01 * sigma, "noise was not applied"
    # TODO(synk): torch's uniform_ RNG stream cannot be reproduced bit-exactly;
    # an in-kernel counter-hash PRNG is used instead (same distribution).
    print("KERNEL_OK")
</pallas_src>

<mosaic_0001>
module attributes {stable_mosaic.version = 11 : i64} {
  func.func @_uniform_noise_kernel(%arg0: i32, %arg1: memref<1xi32, #tpu.memory_space<smem>>, %arg2: memref<2x1024xf32, #tpu.memory_space<vmem>>, %arg3: memref<2x1024xf32, #tpu.memory_space<vmem>>) attributes {dimension_semantics = [#tpu.dimension_semantics<parallel>], iteration_bounds = array<i64: 1>, scalar_prefetch = 1 : i64, scratch_operands = 0 : i64, tpu.core_type = #tpu.core_type<tc>, window_params = [{transform_indices = @transform_0, window_bounds = array<i64: 2, 1024>}, {transform_indices = @transform_1, window_bounds = array<i64: 2, 1024>}]} {
    %c2048_i32 = arith.constant 2048 : i32
    %0 = arith.muli %arg0, %c2048_i32 : i32
    %1 = tpu.iota {dimensions = array<i32: 0>} : vector<2x1024xi32>
    %2 = tpu.iota {dimensions = array<i32: 1>} : vector<2x1024xi32>
    %c1024_i32 = arith.constant 1024 : i32
    %3 = vector.broadcast %c1024_i32 : i32 to vector<2x1024xi32>
    %4 = arith.muli %1, %3 : vector<2x1024xi32>
    %5 = vector.broadcast %0 : i32 to vector<2x1024xi32>
    %6 = arith.addi %5, %4 : vector<2x1024xi32>
    %7 = arith.addi %6, %2 : vector<2x1024xi32>
    %c0 = arith.constant 0 : index
    %8 = memref.load %arg1[%c0] : memref<1xi32, #tpu.memory_space<smem>>
    %c-1640531527_i32 = arith.constant -1640531527 : i32
    %9 = arith.muli %8, %c-1640531527_i32 : i32
    %10 = vector.broadcast %9 : i32 to vector<2x1024xi32>
    %11 = arith.xori %7, %10 : vector<2x1024xi32>
    %c16_i32 = arith.constant 16 : i32
    %12 = vector.broadcast %c16_i32 : i32 to vector<2x1024xi32>
    %13 = arith.shrui %11, %12 : vector<2x1024xi32>
    %14 = arith.xori %11, %13 : vector<2x1024xi32>
    %c2146121005_i32 = arith.constant 2146121005 : i32
    %15 = vector.broadcast %c2146121005_i32 : i32 to vector<2x1024xi32>
    %16 = arith.muli %14, %15 : vector<2x1024xi32>
    %c15_i32 = arith.constant 15 : i32
    %17 = vector.broadcast %c15_i32 : i32 to vector<2x1024xi32>
    %18 = arith.shrui %16, %17 : vector<2x1024xi32>
    %19 = arith.xori %16, %18 : vector<2x1024xi32>
    %c-2073254261_i32 = arith.constant -2073254261 : i32
    %20 = vector.broadcast %c-2073254261_i32 : i32 to vector<2x1024xi32>
    %21 = arith.muli %19, %20 : vector<2x1024xi32>
    %c16_i32_0 = arith.constant 16 : i32
    %22 = vector.broadcast %c16_i32_0 : i32 to vector<2x1024xi32>
    %23 = arith.shrui %21, %22 : vector<2x1024xi32>
    %24 = arith.xori %21, %23 : vector<2x1024xi32>
    %25 = tpu.bitcast %24 : vector<2x1024xi32> -> vector<2x1024xi32>
    %26 = arith.sitofp %25 : vector<2x1024xi32> to vector<2x1024xf32>
    %cst = arith.constant 4.65661294E-11 : f32
    %27 = vector.broadcast %cst : f32 to vector<2x1024xf32>
    %28 = arith.mulf %26, %27 : vector<2x1024xf32>
    %c0_1 = arith.constant 0 : index
    %c0_2 = arith.constant 0 : index
    %29 = vector.load %arg2[%c0_1, %c0_2] : memref<2x1024xf32, #tpu.memory_space<vmem>>, vector<2x1024xf32>
    %30 = arith.addf %29, %28 : vector<2x1024xf32>
    %c0_3 = arith.constant 0 : index
    %c0_4 = arith.constant 0 : index
    %31 = vector.load %arg3[%c0_3, %c0_4] : memref<2x1024xf32, #tpu.memory_space<vmem>>, vector<2x1024xf32>
    tpu.vector_store %arg3[%c0_3, %c0_4], %30 {strides = array<i32>} : memref<2x1024xf32, #tpu.memory_space<vmem>>, vector<2x1024xf32>,
    return
  }
  func.func @transform_0(%arg0: i32, %arg1: memref<1xi32, #tpu.memory_space<smem>>) -> (i32, i32) {
    %c0_i32 = arith.constant 0 : i32
    %c0_i32_0 = arith.constant 0 : i32
    return %arg0, %c0_i32 : i32, i32
  }
  func.func @transform_1(%arg0: i32, %arg1: memref<1xi32, #tpu.memory_space<smem>>) -> (i32, i32) {
    %c0_i32 = arith.constant 0 : i32
    %c0_i32_0 = arith.constant 0 : i32
    return %arg0, %c0_i32 : i32, i32
  }
}

</mosaic_0001>

<bundles_post_ra>
// kernel: tpu_custom_call.1
= control target key start
LH: loop header
LB: loop body
LE: loop exit
PB: predicated region body
PF: predicated region fallthrough
CT: control target
= control target key end

     0   :  { %8 = vsyncpa [#allocation5], 0  ;;  %s304_s0 = inlined_call_operand.<no memory space> [shape: s32[1], index: 0, kind: input, shape index: {}]   ;;  %s305_s1 = inlined_call_operand.hbm [shape: f32[2,1024], index: 1, kind: input, shape index: {}]   ;;  %s306_s2 = inlined_call_operand.hbm [shape: f32[2,1024], index: 2, kind: output, shape index: {}]  }
   0x1   :  { %9 = vsyncpa [#allocation6], 0  ;;  %s253_s9 = smov [#allocation4]   ;;  %s205_s13 = scalar_lea.hbm %s305_s1, 256 }
   0x2   :  { %s16_s10 = sshll.u32 %s253_s9, 4  ;;  %p206_p0 = scmp.ne.s32.totalorder %s305_s1, %s205_s13  ;;  %s17_s10 = int_to_ptr.vmem [resolvable:$true] %s16_s10 }
   0x3   :  { %p209_p1 = scmp.lt.u32.totalorder %s205_s13, %s305_s1 }
   0x5   :  { %p211_p2 = pnand %p209_p1, %p206_p0 }
   0x7   :  { %214 = shalt.err (!%p211_p2)
}
   0x8   :  { %s215_s18 = scalar_lea.vmem %s17_s10, 256  ;;  %p220_p4 = scmp.lt.s32.totalorder %s17_s10, %s17_s10 }
   0x9   :  { %p216_p3 = scmp.ne.s32.totalorder %s17_s10, %s215_s18  ;;  %p221_p5 = scmp.lt.s32.totalorder %s215_s18, %s215_s18 }
   0xb   :  { %p222_p6 = por %p221_p5, %p220_p4 }
   0xd   :  { %p223_p7 = pnand %p222_p6, %p216_p3 }
   0xf   :  { %226 = shalt.err (!%p223_p7)
}
  0x10   :  { %19 = dma.hbm_to_vmem [thread:$0]  %s305_s1, 256, %s17_s10, [#allocation5]  }
  0x11   :  { %249 = dma.done.wait [#allocation5], 256  }
  0x12   :  { %250 = vsyncadd [#allocation5], 4294967040  ;;  %v24_v0 = vlaneseq  ;;  %s47_s23 = smul.u32 2654435769, %s304_s0  ;;  %v254_v1 = vmov 1983009808  }
  0x13   :  { %v150_v2 = vunpack.c.l.s4 %v254_v1  ;;  %s255_s0 = smov [#allocation7]  }
  0x14   :  { %v25_v3 = vshrl.u32 %v24_v0, 7  ;;  %v27_v4 = vand.u32 127, %v24_v0  ;;  %v48_v5 = vstv %s47_s23  ;;  %s193_s1 = sshll.u32 %s255_s0, 4  ;;  %s194_s1 = int_to_ptr.vmem [resolvable:$true] %s193_s1 }
  0x15   :  { %v151_v10 = vunpack.c.0.s8 %v150_v2  ;;  %s227_s24 = scalar_lea.vmem %s194_s1, 256  ;;  %p232_p9 = scmp.lt.s32.totalorder %s194_s1, %s194_s1 }
  0x16   :  { %v28_v6 = vadd.s32 128, %v27_v4  ;;  %v29_v7 = vadd.s32 256, %v27_v4  ;;  %v30_v8 = vadd.s32 384, %v27_v4  ;;  %v35_v9 = vmul.u32 1024, %v25_v3  ;;  %p228_p8 = scmp.ne.s32.totalorder %s194_s1, %s227_s24  ;;  %p233_p10 = scmp.lt.s32.totalorder %s227_s24, %s227_s24 }
  0x17   :  { %v31_v11 = vadd.s32 512, %v27_v4  ;;  %v32_v12 = vadd.s32 640, %v27_v4  ;;  %v33_v13 = vadd.s32 768, %v27_v4  ;;  %v34_v18 = vadd.s32 896, %v27_v4 }
  0x18   :  { %v38_v14 = vadd.s32 %v35_v9, %v27_v4  ;;  %v39_v15 = vadd.s32 %v35_v9, %v28_v6  ;;  %v40_v16 = vadd.s32 %v35_v9, %v29_v7  ;;  %v41_v17 = vadd.s32 %v35_v9, %v30_v8  ;;  %p234_p11 = por %p233_p10, %p232_p9 }
  0x19   :  { %v42_v19 = vadd.s32 %v35_v9, %v31_v11  ;;  %v43_v20 = vadd.s32 %v35_v9, %v32_v12  ;;  %v44_v21 = vadd.s32 %v35_v9, %v33_v13  ;;  %v45_v26 = vadd.s32 %v35_v9, %v34_v18 }
  0x1a   :  { %v49_v22 = vxor.u32 %v48_v5, %v38_v14  ;;  %v50_v23 = vxor.u32 %v48_v5, %v39_v15  ;;  %v51_v24 = vxor.u32 %v48_v5, %v40_v16  ;;  %v52_v25 = vxor.u32 %v48_v5, %v41_v17  ;;  %p235_p12 = pnand %p234_p11, %p228_p8 }
  0x1b   :  { %v53_v27 = vxor.u32 %v48_v5, %v42_v19  ;;  %v54_v28 = vxor.u32 %v48_v5, %v43_v20  ;;  %v55_v29 = vxor.u32 %v48_v5, %v44_v21  ;;  %v56_v34 = vxor.u32 %v48_v5, %v45_v26 }
  0x1c   :  { %v57_v30 = vshrl.u32 %v49_v22, 16  ;;  %v58_v31 = vshrl.u32 %v50_v23, 16  ;;  %v59_v32 = vshrl.u32 %v51_v24, 16  ;;  %v60_v33 = vshrl.u32 %v52_v25, 16 }
  0x1d   :  { %v61_v35 = vshrl.u32 %v53_v27, 16  ;;  %v62_v36 = vshrl.u32 %v54_v28, 16  ;;  %v63_v37 = vshrl.u32 %v55_v29, 16  ;;  %v64_v42 = vshrl.u32 %v56_v34, 16 }
  0x1e   :  { %v65_v38 = vxor.u32 %v57_v30, %v49_v22  ;;  %v66_v39 = vxor.u32 %v58_v31, %v50_v23  ;;  %v67_v40 = vxor.u32 %v59_v32, %v51_v24  ;;  %v68_v41 = vxor.u32 %v60_v33, %v52_v25 }
  0x1f   :  { %v69_v43 = vxor.u32 %v61_v35, %v53_v27  ;;  %v70_v44 = vxor.u32 %v62_v36, %v54_v28  ;;  %v71_v45 = vxor.u32 %v63_v37, %v55_v29  ;;  %v286_v50 = vsub.s32 %v151_v10, %v25_v3 }
  0x20   :  { %v73_v46 = vmul.u32 2146121005, %v65_v38  ;;  %v74_v47 = vmul.u32 2146121005, %v66_v39  ;;  %v72_v51 = vxor.u32 %v64_v42, %v56_v34 }
  0x21   :  { %v75_v48 = vmul.u32 2146121005, %v67_v40  ;;  %v76_v49 = vmul.u32 2146121005, %v68_v41 }
  0x22   :  { %v81_v52 = vshrl.u32 %v73_v46, 15  ;;  %v82_v53 = vshrl.u32 %v74_v47, 15  ;;  %v77_v54 = vmul.u32 2146121005, %v69_v43  ;;  %v78_v55 = vmul.u32 2146121005, %v70_v44 }
  0x23   :  { %v83_v56 = vshrl.u32 %v75_v48, 15  ;;  %v84_v57 = vshrl.u32 %v76_v49, 15  ;;  %v79_v58 = vmul.u32 2146121005, %v71_v45  ;;  %v80_v59 = vmul.u32 2146121005, %v72_v51 }
  0x24   :  { %v89_v60 = vxor.u32 %v81_v52, %v73_v46  ;;  %v90_v61 = vxor.u32 %v82_v53, %v74_v47  ;;  %v85_v62 = vshrl.u32 %v77_v54, 15  ;;  %v86_v63 = vshrl.u32 %v78_v55, 15 }
  0x25   :  { %v91_v0 = vxor.u32 %v83_v56, %v75_v48  ;;  %v92_v1 = vxor.u32 %v84_v57, %v76_v49  ;;  %v87_v2 = vshrl.u32 %v79_v58, 15  ;;  %v88_v4 = vshrl.u32 %v80_v59, 15 }
  0x26   :  { %v97_v5 = vmul.u32 2221713035, %v89_v60  ;;  %v98_v3 = vmul.u32 2221713035, %v90_v61  ;;  %v93_v6 = vxor.u32 %v85_v62, %v77_v54  ;;  %v94_v7 = vxor.u32 %v86_v63, %v78_v55  ;;  %v137_v55 = vld [vmem:[#allocation4] sm:$0xff] }
  0x27   :  { %v99_v8 = vmul.u32 2221713035, %v91_v0  ;;  %v100_v9 = vmul.u32 2221713035, %v92_v1  ;;  %v95_v10 = vxor.u32 %v87_v2, %v79_v58  ;;  %v96_v11 = vxor.u32 %v88_v4, %v80_v59  ;;  %v138_v59 = vld [vmem:[#allocation4 + $0x8] sm:$0xff] }
  0x28   :  { %v105_v12 = vshrl.u32 %v97_v5, 16  ;;  %v106_v13 = vshrl.u32 %v98_v3, 16  ;;  %v101_v14 = vmul.u32 2221713035, %v93_v6  ;;  %v102_v15 = vmul.u32 2221713035, %v94_v7 }
  0x29   :  { %v107_v16 = vshrl.u32 %v99_v8, 16  ;;  %v108_v17 = vshrl.u32 %v100_v9, 16  ;;  %v103_v18 = vmul.u32 2221713035, %v95_v10  ;;  %v104_v19 = vmul.u32 2221713035, %v96_v11 }
  0x2a   :  { %v113_v20 = vxor.u32 %v105_v12, %v97_v5  ;;  %v114_v21 = vxor.u32 %v106_v13, %v98_v3  ;;  %v109_v22 = vshrl.u32 %v101_v14, 16  ;;  %v110_v23 = vshrl.u32 %v102_v15, 16 }
  0x2b   :  { %v115_v24 = vxor.u32 %v107_v16, %v99_v8  ;;  %v116_v25 = vxor.u32 %v108_v17, %v100_v9  ;;  %v111_v26 = vshrl.u32 %v103_v18, 16  ;;  %v112_v27 = vshrl.u32 %v104_v19, 16 }
  0x2c   :  { %v121_v28 = vcvt.s32.f32 %v113_v20  ;;  %v122_v29 = vcvt.s32.f32 %v114_v21  ;;  %v117_v30 = vxor.u32 %v109_v22, %v101_v14  ;;  %v118_v31 = vxor.u32 %v110_v23, %v102_v15 }
  0x2d   :  { %v123_v32 = vcvt.s32.f32 %v115_v24  ;;  %v124_v33 = vcvt.s32.f32 %v116_v25  ;;  %v119_v34 = vxor.u32 %v111_v26, %v103_v18  ;;  %v120_v35 = vxor.u32 %v112_v27, %v104_v19 }
  0x2e   :  { %v129_v36 = vmul.f32 4.656613e-11, %v121_v28  ;;  %v130_v37 = vmul.f32 4.656613e-11, %v122_v29  ;;  %v125_v38 = vcvt.s32.f32 %v117_v30  ;;  %v126_v39 = vcvt.s32.f32 %v118_v31 }
  0x2f   :  { %v131_v40 = vmul.f32 4.656613e-11, %v123_v32  ;;  %v132_v41 = vmul.f32 4.656613e-11, %v124_v33  ;;  %v127_v42 = vcvt.s32.f32 %v119_v34  ;;  %v128_v43 = vcvt.s32.f32 %v120_v35 }
  0x30   :  { %v147_v44 = vcombine.low %v129_v36, %v130_v37  ;;  %v133_v45 = vmul.f32 4.656613e-11, %v125_v38  ;;  %v134_v46 = vmul.f32 4.656613e-11, %v126_v39 }
  0x31   :  { %v148_v47 = vcombine.low %v131_v40, %v132_v41  ;;  %v135_v48 = vmul.f32 4.656613e-11, %v127_v42  ;;  %v136_v49 = vmul.f32 4.656613e-11, %v128_v43 }
  0x32   :  { %v155_v51 = vrot.slane %v147_v44, %v286_v50  ;;  %v164_v52 = vcombine.low %v133_v45, %v134_v46 }
  0x33   :  { %v162_v53 = vrot.slane %v148_v47, %v286_v50  ;;  %v165_v54 = vcombine.low %v135_v48, %v136_v49 }
  0x34   :  { %v172_v56 = vrot.slane %v164_v52, %v286_v50 }
  0x35   :  { %v163_v57 = vcombine.low %v155_v51, %v162_v53  ;;  %v179_v58 = vrot.slane %v165_v54, %v286_v50 }
  0x37   :  { %v183_v60 = vadd.f32 %v163_v57, %v137_v55  ;;  %v180_v61 = vcombine.low %v172_v56, %v179_v58 }
  0x39   :  { %185 = vst [vmem:[#allocation7] sm:$0xff] %v183_v60  ;;  %v184_v62 = vadd.f32 %v180_v61, %v138_v59 }
  0x3b   :  { %186 = vst [vmem:[#allocation7 + $0x8] sm:$0xff] %v184_v62 }
  0x3c   :  { %238 = shalt.err (!%p235_p12)
}
  0x3d   :  { %s239_s27 = scalar_lea.hbm %s306_s2, 256 }
  0x3e   :  { %p240_p13 = scmp.ne.s32.totalorder %s306_s2, %s239_s27  ;;  %p243_p0 = scmp.lt.u32.totalorder %s239_s27, %s306_s2 }
  0x40   :  { %p245_p1 = pnand %p243_p0, %p240_p13 }
  0x42   :  { %248 = shalt.err (!%p245_p1)
}
  0x43   :  { %196 = dma.vmem_to_hbm [thread:$0]  %s194_s1, 256, %s306_s2, [#allocation6]  }
  0x44   :  { %251 = dma.done.wait [#allocation6], 256  }
  0x45   :  { %252 = vsyncadd [#allocation6], 4294967040 }
  0x46   :  { %200 = vsyncpa [#allocation5], 1 }
  0x47   :  { %201 = vsyncpa [#allocation6], 1 }

</bundles_post_ra>
